<compile_context>
chip_gen: v7x
topology: tpu7x:2x2x1
jax: 0.10.0
libtpu: 0.0.40
codegen_flags: <defaults>
</compile_context>

<pallas_src>
import functools

import jax
import jax.numpy as jnp
from jax.experimental import pallas as pl
from jax.experimental.pallas import tpu as pltpu

P_DROP = 0.15
KEEP = 1.0 - P_DROP


def mlp_kernel(x_ref, m1_ref, m2_ref,
               w1_ref, b1_ref, w2_ref, b2_ref, w3_ref, b3_ref,
               o_ref):
    # layer 1: Linear(10, 256) + ReLU + dropout(0.15)
    x = x_ref[...].astype(jnp.bfloat16)
    h1 = jnp.dot(x, w1_ref[...], preferred_element_type=jnp.float32) + b1_ref[...]
    h1 = jnp.maximum(h1, 0.0) * m1_ref[...]          # mask is pre-scaled {0, 1/keep}

    # layer 2: Linear(256, 128) + ReLU + dropout(0.15)
    h2 = jnp.dot(h1.astype(jnp.bfloat16), w2_ref[...],
                 preferred_element_type=jnp.float32) + b2_ref[...]
    h2 = jnp.maximum(h2, 0.0) * m2_ref[...]

    # layer 3: Linear(128, 4) + sigmoid
    h3 = jnp.dot(h2.astype(jnp.bfloat16), w3_ref[...],
                 preferred_element_type=jnp.float32) + b3_ref[...]
    o_ref[...] = jax.nn.sigmoid(h3).astype(o_ref.dtype)


@functools.partial(jax.jit, static_argnames=("training",))
def net_forward(x, params, dropout_key, training=True):
    """x: (B, 10) float32.  params: dict of pre-transposed (in, out) weights."""
    B = x.shape[0]
    TB = B if B <= 512 else 512                      # batch tile (sweet spot 512-2048)
    num_tiles = pl.cdiv(B, TB)

    w1, b1 = params["w1"], params["b1"]
    w2, b2 = params["w2"], params["b2"]
    w3, b3 = params["w3"], params["b3"]

    # Dropout masks, pre-scaled so the kernel does a single multiply per element.
    # (On real TPU hardware this could instead use pltpu.prng_random_bits with an
    #  integer-threshold compare inside the kernel, but that path has no
    #  CPU-interpret lowering, so masks are generated here for portability.)
    k1, k2 = jax.random.split(dropout_key)
    if training:
        m1 = jax.random.bernoulli(k1, KEEP, (B, 256)).astype(jnp.float32) * (1.0 / KEEP)
        m2 = jax.random.bernoulli(k2, KEEP, (B, 128)).astype(jnp.float32) * (1.0 / KEEP)
    else:
        m1 = jnp.ones((B, 256), jnp.float32)
        m2 = jnp.ones((B, 128), jnp.float32)

    # Advisory cost estimate for the XLA scheduler.
    flops = 2 * B * (10 * 256 + 256 * 128 + 128 * 4)
    transcendentals = B * 4                           # sigmoid exp
    bytes_accessed = (4 * B * (10 + 256 + 128 + 4)    # x, m1, m2, out (f32)
                      + 2 * (10 * 256 + 256 * 128 + 128 * 4)   # bf16 weights
                      + 4 * (256 + 128 + 4))                   # f32 biases

    batch_blk = lambda n: pl.BlockSpec((TB, n), lambda i: (i, 0))
    const_blk = lambda shp: pl.BlockSpec(shp, lambda i: (0, 0))

    grid_spec = pltpu.PrefetchScalarGridSpec(
        num_scalar_prefetch=0,
        grid=(num_tiles,),
        in_specs=[
            batch_blk(10),            # x
            batch_blk(256),           # dropout mask 1
            batch_blk(128),           # dropout mask 2
            const_blk((10, 256)),     # w1  (resident; DMA'd once)
            const_blk((1, 256)),      # b1
            const_blk((256, 128)),    # w2
            const_blk((1, 128)),      # b2
            const_blk((128, 4)),      # w3
            const_blk((1, 4)),        # b3
        ],
        out_specs=batch_blk(4),
    )

    return pl.pallas_call(
        mlp_kernel,
        out_shape=jax.ShapeDtypeStruct((B, 4), jnp.float32),
        grid_spec=grid_spec,
        compiler_params=pltpu.CompilerParams(
            dimension_semantics=("parallel",)),       # v7x: shard batch across 2 TCs
        cost_estimate=pl.CostEstimate(
            flops=flops,
            transcendentals=transcendentals,
            bytes_accessed=bytes_accessed),
    )(x, m1, m2, w1, b1, w2, b2, w3, b3)


def init_params(key):
    """Torch-style Linear init; weights stored pre-transposed (in, out) in bf16."""
    ks = jax.random.split(key, 6)

    def linear(kw, kb, fan_in, fan_out):
        bound = 1.0 / jnp.sqrt(jnp.float32(fan_in))
        w = jax.random.uniform(kw, (fan_in, fan_out), jnp.float32, -bound, bound)
        b = jax.random.uniform(kb, (1, fan_out), jnp.float32, -bound, bound)
        return w.astype(jnp.bfloat16), b            # bf16 weights, f32 biases

    w1, b1 = linear(ks[0], ks[1], 10, 256)
    w2, b2 = linear(ks[2], ks[3], 256, 128)
    w3, b3 = linear(ks[4], ks[5], 128, 4)
    return {"w1": w1, "b1": b1, "w2": w2, "b2": b2, "w3": w3, "b3": b3}


if __name__ == "__main__":
    key = jax.random.PRNGKey(0)
    pkey, xkey, dkey = jax.random.split(key, 3)

    params = init_params(pkey)
    x = jax.random.normal(xkey, (8, 10), jnp.float32)   # batch=8, features=10

    out = net_forward(x, params, dkey, training=True)
    out = jax.block_until_ready(out)

    assert out.shape == (8, 4)
    assert bool(jnp.all(jnp.isfinite(out)))
    assert bool(jnp.all((out >= 0.0) & (out <= 1.0)))    # sigmoid range
    print("KERNEL_OK")
</pallas_src>

<mosaic_0001>
module attributes {stable_mosaic.version = 11 : i64} {
  func.func @mlp_kernel(%arg0: i32, %arg1: memref<8x10xf32, #tpu.memory_space<vmem>>, %arg2: memref<8x256xf32, #tpu.memory_space<vmem>>, %arg3: memref<8x128xf32, #tpu.memory_space<vmem>>, %arg4: memref<10x256xbf16, #tpu.memory_space<vmem>>, %arg5: memref<1x256xf32, #tpu.memory_space<vmem>>, %arg6: memref<256x128xbf16, #tpu.memory_space<vmem>>, %arg7: memref<1x128xf32, #tpu.memory_space<vmem>>, %arg8: memref<128x4xbf16, #tpu.memory_space<vmem>>, %arg9: memref<1x4xf32, #tpu.memory_space<vmem>>, %arg10: memref<8x4xf32, #tpu.memory_space<vmem>>) attributes {dimension_semantics = [#tpu.dimension_semantics<parallel>], iteration_bounds = array<i64: 1>, scalar_prefetch = 0 : i64, scratch_operands = 0 : i64, tpu.core_type = #tpu.core_type<tc>, window_params = [{transform_indices = @transform_0, window_bounds = array<i64: 8, 10>}, {transform_indices = @transform_1, window_bounds = array<i64: 8, 256>}, {transform_indices = @transform_2, window_bounds = array<i64: 8, 128>}, {pipeline_mode = #tpu.pipeline_mode<synchronous>, transform_indices = @transform_3, window_bounds = array<i64: 10, 256>}, {pipeline_mode = #tpu.pipeline_mode<synchronous>, transform_indices = @transform_4, window_bounds = array<i64: 1, 256>}, {pipeline_mode = #tpu.pipeline_mode<synchronous>, transform_indices = @transform_5, window_bounds = array<i64: 256, 128>}, {pipeline_mode = #tpu.pipeline_mode<synchronous>, transform_indices = @transform_6, window_bounds = array<i64: 1, 128>}, {pipeline_mode = #tpu.pipeline_mode<synchronous>, transform_indices = @transform_7, window_bounds = array<i64: 128, 4>}, {pipeline_mode = #tpu.pipeline_mode<synchronous>, transform_indices = @transform_8, window_bounds = array<i64: 1, 4>}, {transform_indices = @transform_9, window_bounds = array<i64: 8, 4>}]} {
    %c0 = arith.constant 0 : index
    %c0_0 = arith.constant 0 : index
    %0 = vector.load %arg1[%c0, %c0_0] : memref<8x10xf32, #tpu.memory_space<vmem>>, vector<8x10xf32>
    %1 = arith.truncf %0 : vector<8x10xf32> to vector<8x10xbf16>
    %c0_1 = arith.constant 0 : index
    %c0_2 = arith.constant 0 : index
    %2 = vector.load %arg4[%c0_1, %c0_2] : memref<10x256xbf16, #tpu.memory_space<vmem>>, vector<10x256xbf16>
    %cst = arith.constant dense<0.000000e+00> : vector<8x256xf32>
    %3 = tpu.matmul %1, %2, %cst {dimension_numbers = #tpu.dot_dimension_numbers<[1], [0], [0], [1], [0, 0, 1, 1], [], []>} : vector<8x10xbf16>, vector<10x256xbf16>, vector<8x256xf32> -> vector<8x256xf32>
    %c0_3 = arith.constant 0 : index
    %c0_4 = arith.constant 0 : index
    %4 = vector.load %arg5[%c0_3, %c0_4] : memref<1x256xf32, #tpu.memory_space<vmem>>, vector<1x256xf32>
    %5 = vector.broadcast %4 : vector<1x256xf32> to vector<8x256xf32>
    %6 = arith.addf %3, %5 : vector<8x256xf32>
    %cst_5 = arith.constant 0.000000e+00 : f32
    %7 = vector.broadcast %cst_5 : f32 to vector<8x256xf32>
    %8 = arith.maximumf %6, %7 : vector<8x256xf32>
    %c0_6 = arith.constant 0 : index
    %c0_7 = arith.constant 0 : index
    %9 = vector.load %arg2[%c0_6, %c0_7] : memref<8x256xf32, #tpu.memory_space<vmem>>, vector<8x256xf32>
    %10 = arith.mulf %8, %9 : vector<8x256xf32>
    %11 = arith.truncf %10 : vector<8x256xf32> to vector<8x256xbf16>
    %c0_8 = arith.constant 0 : index
    %c0_9 = arith.constant 0 : index
    %12 = vector.load %arg6[%c0_8, %c0_9] : memref<256x128xbf16, #tpu.memory_space<vmem>>, vector<256x128xbf16>
    %cst_10 = arith.constant dense<0.000000e+00> : vector<8x128xf32>
    %13 = tpu.matmul %11, %12, %cst_10 {dimension_numbers = #tpu.dot_dimension_numbers<[1], [0], [0], [1], [0, 0, 1, 1], [], []>} : vector<8x256xbf16>, vector<256x128xbf16>, vector<8x128xf32> -> vector<8x128xf32>
    %c0_11 = arith.constant 0 : index
    %c0_12 = arith.constant 0 : index
    %14 = vector.load %arg7[%c0_11, %c0_12] : memref<1x128xf32, #tpu.memory_space<vmem>>, vector<1x128xf32>
    %15 = vector.broadcast %14 : vector<1x128xf32> to vector<8x128xf32>
    %16 = arith.addf %13, %15 : vector<8x128xf32>
    %cst_13 = arith.constant 0.000000e+00 : f32
    %17 = vector.broadcast %cst_13 : f32 to vector<8x128xf32>
    %18 = arith.maximumf %16, %17 : vector<8x128xf32>
    %c0_14 = arith.constant 0 : index
    %c0_15 = arith.constant 0 : index
    %19 = vector.load %arg3[%c0_14, %c0_15] : memref<8x128xf32, #tpu.memory_space<vmem>>, vector<8x128xf32>
    %20 = arith.mulf %18, %19 : vector<8x128xf32>
    %21 = arith.truncf %20 : vector<8x128xf32> to vector<8x128xbf16>
    %c0_16 = arith.constant 0 : index
    %c0_17 = arith.constant 0 : index
    %22 = vector.load %arg8[%c0_16, %c0_17] : memref<128x4xbf16, #tpu.memory_space<vmem>>, vector<128x4xbf16>
    %cst_18 = arith.constant dense<0.000000e+00> : vector<8x4xf32>
    %23 = tpu.matmul %21, %22, %cst_18 {dimension_numbers = #tpu.dot_dimension_numbers<[1], [0], [0], [1], [0, 0, 1, 1], [], []>} : vector<8x128xbf16>, vector<128x4xbf16>, vector<8x4xf32> -> vector<8x4xf32>
    %c0_19 = arith.constant 0 : index
    %c0_20 = arith.constant 0 : index
    %24 = vector.load %arg9[%c0_19, %c0_20] : memref<1x4xf32, #tpu.memory_space<vmem>>, vector<1x4xf32>
    %25 = vector.broadcast %24 : vector<1x4xf32> to vector<8x4xf32>
    %26 = arith.addf %23, %25 : vector<8x4xf32>
    %27 = arith.negf %26 : vector<8x4xf32>
    %28 = math.exp %27 : vector<8x4xf32>
    %cst_21 = arith.constant 1.000000e+00 : f32
    %29 = vector.broadcast %cst_21 : f32 to vector<8x4xf32>
    %30 = arith.addf %29, %28 : vector<8x4xf32>
    %31 = arith.divf %29, %30 : vector<8x4xf32>
    %c0_22 = arith.constant 0 : index
    %c0_23 = arith.constant 0 : index
    %32 = vector.load %arg10[%c0_22, %c0_23] : memref<8x4xf32, #tpu.memory_space<vmem>>, vector<8x4xf32>
    tpu.vector_store %arg10[%c0_22, %c0_23], %31 {strides = array<i32>} : memref<8x4xf32, #tpu.memory_space<vmem>>, vector<8x4xf32>,
    return
  }
  func.func @transform_0(%arg0: i32) -> (i32, i32) {
    %c0_i32 = arith.constant 0 : i32
    %c0_i32_0 = arith.constant 0 : i32
    return %arg0, %c0_i32 : i32, i32
  }
  func.func @transform_1(%arg0: i32) -> (i32, i32) {
    %c0_i32 = arith.constant 0 : i32
    %c0_i32_0 = arith.constant 0 : i32
    return %arg0, %c0_i32 : i32, i32
  }
  func.func @transform_2(%arg0: i32) -> (i32, i32) {
    %c0_i32 = arith.constant 0 : i32
    %c0_i32_0 = arith.constant 0 : i32
    return %arg0, %c0_i32 : i32, i32
  }
  func.func @transform_3(%arg0: i32) -> (i32, i32) {
    %c0_i32 = arith.constant 0 : i32
    %c0_i32_0 = arith.constant 0 : i32
    %c0_i32_1 = arith.constant 0 : i32
    return %c0_i32, %c0_i32_0 : i32, i32
  }
  func.func @transform_4(%arg0: i32) -> (i32, i32) {
    %c0_i32 = arith.constant 0 : i32
    %c0_i32_0 = arith.constant 0 : i32
    %c0_i32_1 = arith.constant 0 : i32
    return %c0_i32, %c0_i32_0 : i32, i32
  }
  func.func @transform_5(%arg0: i32) -> (i32, i32) {
    %c0_i32 = arith.constant 0 : i32
    %c0_i32_0 = arith.constant 0 : i32
    %c0_i32_1 = arith.constant 0 : i32
    return %c0_i32, %c0_i32_0 : i32, i32
  }
  func.func @transform_6(%arg0: i32) -> (i32, i32) {
    %c0_i32 = arith.constant 0 : i32
    %c0_i32_0 = arith.constant 0 : i32
    %c0_i32_1 = arith.constant 0 : i32
    return %c0_i32, %c0_i32_0 : i32, i32
  }
  func.func @transform_7(%arg0: i32) -> (i32, i32) {
    %c0_i32 = arith.constant 0 : i32
    %c0_i32_0 = arith.constant 0 : i32
    %c0_i32_1 = arith.constant 0 : i32
    return %c0_i32, %c0_i32_0 : i32, i32
  }
  func.func @transform_8(%arg0: i32) -> (i32, i32) {
    %c0_i32 = arith.constant 0 : i32
    %c0_i32_0 = arith.constant 0 : i32
    %c0_i32_1 = arith.constant 0 : i32
    return %c0_i32, %c0_i32_0 : i32, i32
  }
  func.func @transform_9(%arg0: i32) -> (i32, i32) {
    %c0_i32 = arith.constant 0 : i32
    %c0_i32_0 = arith.constant 0 : i32
    return %arg0, %c0_i32 : i32, i32
  }
}

</mosaic_0001>

<bundles_post_ra>
// kernel: net_forward.3
= control target key start
LH: loop header
LB: loop body
LE: loop exit
PB: predicated region body
PF: predicated region fallthrough
CT: control target
= control target key end

     0   :  { %vm61_vm0 = vcmask 1044480   ;;  %v535_v1 = vmov 0   ;;  %vm57_vm1 = vcmask 80896   ;;  %v536_v22 = vmov 0.0   ;;  %s690_s3 = inlined_call_operand.vmem [shape: bf16[10,256], index: 3, kind: input, shape index: {}]   ;;  %s691_s0 = inlined_call_operand.vmem [shape: f32[8,10], index: 0, kind: input, shape index: {}]   ;;  %s692_s5 = inlined_call_operand.vmem [shape: bf16[256,128], index: 5, kind: input, shape index: {}]   ;;  %s693_s7 = inlined_call_operand.vmem [shape: bf16[128,4], index: 7, kind: input, shape index: {}]   ;;  %s694_s4 = inlined_call_operand.vmem [shape: f32[1,256], index: 4, kind: input, shape index: {}]   ;;  %s695_s1 = inlined_call_operand.vmem [shape: f32[8,256], index: 1, kind: input, shape index: {}]   ;;  %s696_s6 = inlined_call_operand.vmem [shape: f32[1,128], index: 6, kind: input, shape index: {}]   ;;  %s697_s2 = inlined_call_operand.vmem [shape: f32[8,128], index: 2, kind: input, shape index: {}]   ;;  %s698_s8 = inlined_call_operand.vmem [shape: f32[1,4], index: 8, kind: input, shape index: {}]   ;;  %s699_s9 = inlined_call_operand.vmem [shape: f32[8,4], index: 9, kind: output, shape index: {}]  }
   0x1   :  { %v504_v0 = vld [vmem:[%s690_s3 + $0x4] ss:$8 sps:$4 sm:$0x1f]   ;;  %100 = vmatprep.mubr.bf16.mxu0 %v535_v1  ;;  %v506_v2 = vld [vmem:[%s690_s3] ss:$8 sps:$4 sm:$0x1f]   ;;  %v39_v28 = vlaneseq }
   0x2   :  { %v33_v3 = vld [vmem:[%s691_s0] sm:$0xff]  ;;  %421 = vmatprep.subr.msk.bf16.mxu0 %vm61_vm0, %v504_v0  ;;  %v63_v5 = vsel %vm61_vm0, %v506_v2, 0  ;;  %v509_v8 = vld [vmem:[%s692_s5 + $0x48] sm:$0xff]   ;;  %v511_v10 = vld [vmem:[%s692_s5 + $0x50] sm:$0xff]   ;;  %vm537_vm2 = vmmov 0   ;;  %vm413_vm3 = vcmask 31744  }
   0x3   :  { %v507_v4 = vld [vmem:[%s692_s5 + $0x40] sm:$0xff]   ;;  %v34_v6 = vpack.c.bf16 %v33_v3, %v33_v3  ;;  %69 = vmatpush1.bf16.msra.mxu0 %v63_v5  ;;  %v510_v9 = vld [vmem:[%s692_s5 + $0x8] sm:$0xff]   ;;  %v512_v11 = vld [vmem:[%s692_s5 + $0x10] sm:$0xff]   ;;  %v40_v29 = vshrl.u32 %v39_v28, 7 }
   0x4   :  { %v508_v7 = vld [vmem:[%s692_s5] sm:$0xff]   ;;  %450 = vmatprep.subr.bf16.mxu1 %v507_v4  ;;  %v513_v12 = vld [vmem:[%s692_s5 + $0x58] sm:$0xff]   ;;  %v517_v16 = vld [vmem:[%s692_s5 + $0x68] sm:$0xff]   ;;  %481 = vmatprep.subr.bf16.mxu0 %v536_v22 }
   0x5   :  { %451 = vmatpush3.bf16.msra.mxu1 %v508_v7  ;;  %v514_v13 = vld [vmem:[%s692_s5 + $0x18] sm:$0xff]   ;;  %v515_v14 = vld [vmem:[%s692_s5 + $0x60] sm:$0xff]   ;;  %v518_v17 = vld [vmem:[%s692_s5 + $0x28] sm:$0xff]   ;;  %v41_v30 = vsub.s32 0, %v40_v29  ;;  %v45_v32 = vsub.s32 1, %v40_v29 }
   0x6   :  { %452 = vmatprep.subr.bf16.mxu1 %v509_v8  ;;  %422 = vmatmul.mubr.msk.bf16.vlgmr.msra.gmra.mrb[0].mxu0 %vm57_vm1, %v34_v6  ;;  %v516_v15 = vld [vmem:[%s692_s5 + $0x20] sm:$0xff]   ;;  %v519_v18 = vld [vmem:[%s692_s5 + $0x70] sm:$0xff]   ;;  %v521_v20 = vld [vmem:[%s692_s5 + $0x78] sm:$0xff]  }
   0x7   :  { %v520_v19 = vld [vmem:[%s692_s5 + $0x30] sm:$0xff]   ;;  %v522_v21 = vld [vmem:[%s692_s5 + $0x38] sm:$0xff]   ;;  %v523_v23 = vld [vmem:[%s693_s7] sm:$0xff]   ;;  %497 = vmatprep.mubr.msk.bf16.mxu0 %vm537_vm2, %v536_v22 }
   0x8   :  { %482 = vmatpush3.bf16.msra.mxu0 %v523_v23  ;;  %v524_v24 = vld [vmem:[%s693_s7 + $0x8] sm:$0xff]   ;;  %v525_v25 = vld [vmem:[%s693_s7 + $0x10] sm:$0xff]   ;;  %v526_v26 = vld [vmem:[%s693_s7 + $0x18] sm:$0xff]  }
   0x9   :  { %453 = vmatpush3.bf16.msra.mxu1 %v510_v9  ;;  %483 = vmatprep.subr.bf16.mxu0 %v536_v22  ;;  %v527_v27 = vld [vmem:[%s693_s7 + $0x20] sm:$0xff]   ;;  %v112_v43 = vld [vmem:[%s695_s1 + $0x8] sm:$0xff]  ;;  %v529_v50 = vld [vmem:[%s693_s7 + $0x30] sm:$0xff]  }
   0xa   :  { %454 = vmatprep.subr.bf16.mxu1 %v511_v10  ;;  %v37_v31 = vld [vmem:[%s694_s4] sm:$0x3]  ;;  %v528_v49 = vld [vmem:[%s693_s7 + $0x28] sm:$0xff]   ;;  %v530_v51 = vld [vmem:[%s693_s7 + $0x38] sm:$0xff]  }
   0xb   :  { %v42_v33 = vrot.slane %v37_v31, %v41_v30  ;;  %v46_v34 = vrot.slane %v37_v31, %v45_v32  ;;  %v111_v40 = vld [vmem:[%s695_s1] sm:$0xff] }
   0xc   :  { %484 = vmatpush3.bf16.msra.mxu0 %v524_v24  ;;  %v423_v53 = vld [vmem:[%s696_s6] ss:$0 sm:$0xff] }
   0xd   :  { %455 = vmatpush3.bf16.msra.mxu1 %v512_v11  ;;  %485 = vmatprep.subr.bf16.mxu0 %v536_v22  ;;  %v293_v59 = vld [vmem:[%s697_s2] sm:$0xff] }
   0xe   :  { %456 = vmatprep.subr.bf16.mxu1 %v513_v12  ;;  %v440_v63 = vld [vmem:[%s698_s8] ss:$0 sm:$0xff] }
  0x10   :  { %486 = vmatpush3.bf16.msra.mxu0 %v525_v25 }
  0x11   :  { %457 = vmatpush3.bf16.msra.mxu1 %v514_v13  ;;  %487 = vmatprep.subr.bf16.mxu0 %v536_v22 }
  0x12   :  { %458 = vmatprep.subr.bf16.mxu1 %v515_v14 }
  0x14   :  { %488 = vmatpush3.bf16.msra.mxu0 %v526_v26 }
  0x15   :  { %459 = vmatpush3.bf16.msra.mxu1 %v516_v15  ;;  %489 = vmatprep.subr.bf16.mxu0 %v536_v22 }
  0x16   :  { %460 = vmatprep.subr.bf16.mxu1 %v517_v16 }
  0x18   :  { %490 = vmatpush3.bf16.msra.mxu0 %v527_v27 }
  0x19   :  { %461 = vmatpush3.bf16.msra.mxu1 %v518_v17  ;;  %491 = vmatprep.subr.bf16.mxu0 %v536_v22 }
  0x1a   :  { %462 = vmatprep.subr.bf16.mxu1 %v519_v18 }
  0x1c   :  { %492 = vmatpush3.bf16.msra.mxu0 %v528_v49 }
  0x1d   :  { %463 = vmatpush3.bf16.msra.mxu1 %v520_v19  ;;  %493 = vmatprep.subr.bf16.mxu0 %v536_v22 }
  0x1e   :  { %464 = vmatprep.subr.bf16.mxu1 %v521_v20 }
  0x20   :  { %494 = vmatpush3.bf16.msra.mxu0 %v529_v50 }
  0x21   :  { %465 = vmatpush3.bf16.msra.mxu1 %v522_v21  ;;  %495 = vmatprep.subr.bf16.mxu0 %v536_v22 }
  0x24   :  { %496 = vmatpush3.bf16.msra.mxu0 %v530_v51 }
  0xd9   :  { %v102_v35 = vpop.f32.mrb[0].mxu0 }
  0xda   :  { %v103_v36 = vadd.f32 %v102_v35, %v42_v33  ;;  %v104_v37 = vpop.f32.mrb[1].mxu0 }
  0xdb   :  { %v105_v38 = vadd.f32 %v104_v37, %v46_v34  ;;  %v106_v39 = vpop.f32.mrb[2].mxu0 }
  0xdc   :  { %v109_v41 = vmax.f32 %v103_v36, 0.0  ;;  %v107_v42 = vpop.f32.mrb[3].mxu0 }
  0xdd   :  { %v110_v44 = vmax.f32 %v105_v38, 0.0 }
  0xde   :  { %v113_v45 = vmul.f32 %v111_v40, %v109_v41 }
  0xdf   :  { %v114_v46 = vmul.f32 %v112_v43, %v110_v44 }
  0xe0   :  { %v115_v48 = vpack.c.bf16 %v113_v45, %v113_v45 }
  0xe1   :  { %v116_v47 = vpack.c.bf16 %v114_v46, %v114_v46 }
  0xe3   :  { %284 = vmatprep.mubr.bf16.mxu1 %v116_v47 }
  0xe4   :  { %285 = vmatmul.mubr.bf16.vlgmr.msra.gmra.mrb[0].mxu1 %v115_v48 }
 0x1b7   :  { %v466_v52 = vpop.f32.mrb[0].mxu1 }
 0x1b8   :  { %v467_v54 = vpop.f32.mrb[1].mxu1 }
 0x1b9   :  { %v468_v55 = vadd.f32 %v467_v54, %v466_v52  ;;  %v469_v56 = vpop.f32.mrb[2].mxu1 }
 0x1ba   :  { %v470_v57 = vpop.f32.mrb[3].mxu1 }
 0x1bb   :  { %v287_v58 = vadd.f32 %v468_v55, %v423_v53 }
 0x1bd   :  { %v292_v60 = vmax.f32 %v287_v58, 0.0 }
 0x1bf   :  { %v294_v61 = vmul.f32 %v293_v59, %v292_v60 }
 0x1c1   :  { %v295_v62 = vpack.c.bf16 %v294_v61, %v294_v61 }
 0x1c3   :  { %498 = vmatmul.mubr.bf16.vlgmr.msra.gmra.mrb[4].mxu0 %v295_v62 }
 0x296   :  { %v401_v0 = vpop.f32.mrb[4].mxu0 }
 0x297   :  { %v402_v1 = vadd.f32 %v440_v63, %v401_v0  ;;  %v499_v2 = vpop.f32.mrb[5].mxu0 }
 0x298   :  { %v404_v3 = vpop.f32.mrb[6].mxu0 }
 0x299   :  { %v449_v4 = vmul.f32 -1.442695, %v402_v1  ;;  %v500_v5 = vpop.f32.mrb[7].mxu0 }
 0x29b   :  { %531 = vpow2.f32 %v449_v4 }
 0x2a5   :  { %v532_v6 = vpop.eup %531 }
 0x2a6   :  { %v410_v7 = vadd.f32 1.0, %v532_v6 }
 0x2a8   :  { %533 = vrcp.f32 %v410_v7 }
 0x2b2   :  { %v534_v8 = vpop.eup %533 }
 0x2b3   :  { %414 = vst.msk [vmem:[%s699_s9] sm:$0xff] %vm413_vm3, %v534_v8 }

</bundles_post_ra>
